<compile_context>
chip_gen: v6e
topology: v6e:2x2x1
jax: 0.10.0
libtpu: 0.0.40
codegen_flags: <defaults>
</compile_context>

<pallas_src>
import jax
import jax.numpy as jnp
from jax.experimental import pallas as pl
from jax.experimental.pallas import tpu as pltpu


# ------------------------------ Pallas kernels ----------------------------- #
def _stats_kernel(p_ref, w_ref, csum_ref, csq_ref):
    """Pass 1 (stats only): conv for one HW tile as a single matmul, emit the
    per-tile per-(phase,channel) sum / sum-of-squares partials."""
    # (THW, 9*Cin) @ (9*Cin, 4*Cout) -> (THW, 4*Cout), f32 accumulation on MXU.
    acc = jnp.dot(p_ref[0], w_ref[...], preferred_element_type=jnp.float32)
    s1 = jnp.sum(acc, axis=0, keepdims=True)            # (1, 4*Cout)
    s2 = jnp.sum(acc * acc, axis=0, keepdims=True)       # (1, 4*Cout)
    # Output block is (1, 8, 4*Cout) so the stored tile stays (8,128)-shaped;
    # the host only reads sublane row 0 of each tile (rows 1..7 are duplicates).
    csum_ref[0] = jnp.broadcast_to(s1, csum_ref.shape[1:])
    csq_ref[0] = jnp.broadcast_to(s2, csq_ref.shape[1:])


def _conv_norm_mish_kernel(p_ref, w_ref, scale_ref, shift_ref, o_ref):
    """Pass 2: recompute the conv tile (K=9*Cin matmul is ~free on the MXU),
    apply the pre-folded GroupNorm affine (bias, mean, gamma, beta all folded
    into scale/shift -> one FMA), then Mish."""
    acc = jnp.dot(p_ref[0], w_ref[...], preferred_element_type=jnp.float32)
    y = acc * scale_ref[0] + shift_ref[0]

    # Mish: y * tanh(softplus(y)), rational form with ONE sign-folded select:
    #   u = exp(-|y|); c = 1 (y>=0) else u^2
    #   tanh(softplus(y)) = (c + 2u) / (c + 2u + 2*(u^2 + 1 - c))
    u = jnp.exp(-jnp.abs(y))
    uu = u * u
    c = jnp.where(y >= 0.0, 1.0, uu)
    num = c + 2.0 * u
    den = num + 2.0 * (uu + 1.0 - c)
    o_ref[0] = (y * num * pl.reciprocal(den, approx=True)).astype(o_ref.dtype)


# ------------------------------ glue / wrapper ----------------------------- #
def _im2col_3x3(x_nhwc):
    """(B, H, W, C) -> (B, H*W, 9*C): 3x3 neighborhoods of the ORIGINAL image."""
    B, H, W, C = x_nhwc.shape
    xp = jnp.pad(x_nhwc, ((0, 0), (1, 1), (1, 1), (0, 0)))
    cols = [xp[:, dy:dy + H, dx:dx + W, :] for dy in range(3) for dx in range(3)]
    return jnp.concatenate(cols, axis=-1).reshape(B, H * W, 9 * C)


def _fold_upsample_conv_weights(w_oihw):
    """Fold Upsample(2x nearest)+Conv3x3 into 4 phase convs over the original-res
    3x3 neighborhood.  Returns (9*Cin, 4*Cout); rows ordered (dy, dx, cin),
    columns ordered (phase = py*2 + px, cout)."""
    Cout, Cin = w_oihw.shape[0], w_oihw.shape[1]
    # S[p, k, d] = 1 iff kernel row k (0..2) reads source-row offset d-1 for
    # output row-phase p (same matrix applies to columns).
    S = jnp.array([[[1., 0., 0.], [0., 1., 0.], [0., 1., 0.]],
                   [[0., 1., 0.], [0., 1., 0.], [0., 0., 1.]]], jnp.float32)
    wf = jnp.einsum('pyd,qxe,oiyx->pqdeio', S, S, w_oihw.astype(jnp.float32))
    return jnp.transpose(wf, (2, 3, 4, 0, 1, 5)).reshape(9 * Cin, 4 * Cout)


def _pick_hw_tile(hw, cap):
    """Choose an HW row-tile (multiple of 16) and a padded HW that it divides.
    Never falls back to a whole-image block: if no good divisor exists, HW is
    padded up to a multiple of the tile (zero rows contribute 0 to the stats)."""
    g = 16
    cap = max(g, (cap // g) * g)
    if hw <= cap:
        t = -(-hw // g) * g
        return t, t
    for t in range(cap, max(cap // 2, g) - 1, -g):    # prefer a no-padding divisor
        if hw % t == 0:
            return t, hw
    return cap, -(-hw // cap) * cap                    # pad the tail tile


def _block_bytes(shape, dtype):
    """Layout-aware VMEM bytes for one block: sublanes pad to 8, lanes to 128."""
    dims = list(shape) if len(shape) >= 2 else [1] + list(shape)
    lead = 1
    for d in dims[:-2]:
        lead *= int(d)
    sub = -(-int(dims[-2]) // 8) * 8
    lane = -(-int(dims[-1]) // 128) * 128
    return lead * sub * lane * jnp.dtype(dtype).itemsize


def _vmem_limit(blocks):
    """Double-buffered, layout-padded blocks + headroom, capped per generation."""
    need = 2 * sum(_block_bytes(s, d) for s, d in blocks) + (4 << 20)
    cap = 32 << 20
    try:
        cap = int(pltpu.get_tpu_info().vmem_capacity_bytes) // 2
    except Exception:
        pass
    return int(min(max(need, 16 << 20), max(cap, 16 << 20)))


def up_conv_forward(x_nchw, w_oihw, bias, gamma, beta, *, groups=16, eps=1e-5,
                    tile_rows=2048, matmul_dtype=jnp.bfloat16,
                    out_dtype=jnp.float32):
    """Forward pass of up_conv. x_nchw: (B, Cin, H, W) -> (B, Cout, 2H, 2W)."""
    B, Cin, H, W = x_nchw.shape
    Cout = w_oihw.shape[0]
    assert Cout % groups == 0
    cpg = Cout // groups
    HW = H * W
    C4 = 4 * Cout
    KKC = 9 * Cin

    # ---- XLA glue at ORIGINAL resolution (no upsampled tensor in HBM) -------
    # TODO(synk): build these patches in-kernel from 1-row-halo input tiles
    # (manual DMA) to remove the 9x im2col slab entirely.
    x_nhwc = jnp.transpose(x_nchw, (0, 2, 3, 1)).astype(matmul_dtype)
    patches = _im2col_3x3(x_nhwc)                                   # (B, HW, 9*Cin)
    w4 = _fold_upsample_conv_weights(w_oihw).astype(matmul_dtype)   # (9*Cin, 4*Cout)

    THW, HW_pad = _pick_hw_tile(HW, tile_rows)
    n_t = HW_pad // THW
    if HW_pad != HW:
        patches = jnp.pad(patches, ((0, 0), (0, HW_pad - HW), (0, 0)))

    # ------------------- pass 1: per-tile channel statistics -----------------
    vmem1 = _vmem_limit([((1, THW, KKC), matmul_dtype),
                         ((KKC, C4), matmul_dtype),
                         ((1, 8, C4), jnp.float32),
                         ((1, 8, C4), jnp.float32)])
    csum_p, csq_p = pl.pallas_call(
        _stats_kernel,
        out_shape=(jax.ShapeDtypeStruct((B, 8 * n_t, C4), jnp.float32),
                   jax.ShapeDtypeStruct((B, 8 * n_t, C4), jnp.float32)),
        grid_spec=pltpu.PrefetchScalarGridSpec(
            num_scalar_prefetch=0,
            grid=(B, n_t),
            in_specs=[
                pl.BlockSpec((1, THW, KKC), lambda b, t: (b, t, 0)),
                pl.BlockSpec((KKC, C4), lambda b, t: (0, 0)),
            ],
            out_specs=(
                pl.BlockSpec((1, 8, C4), lambda b, t: (b, t, 0)),
                pl.BlockSpec((1, 8, C4), lambda b, t: (b, t, 0)),
            ),
        ),
        compiler_params=pltpu.CompilerParams(
            dimension_semantics=("parallel", "parallel"),
            vmem_limit_bytes=vmem1),
    )(patches, w4)

    # ---- hoisted GroupNorm reduction -> per-batch scale / shift (tiny, XLA) ---
    f32 = jnp.float32
    csum = csum_p[:, ::8, :].sum(axis=1)                  # (B, C4) raw-conv sums
    csq = csq_p[:, ::8, :].sum(axis=1)                    # (B, C4)
    bias4 = jnp.tile(bias.astype(f32), 4)                 # slot = phase*Cout + c
    n_slot = float(HW)                                     # true pixels per slot
    csum_b = csum + n_slot * bias4                         # fold the conv bias
    csq_b = csq + 2.0 * bias4 * csum + n_slot * (bias4 * bias4)
    denom = float(4 * HW * cpg)
    gsum = csum_b.reshape(B, 4, groups, cpg).sum(axis=(1, 3))
    gsq = csq_b.reshape(B, 4, groups, cpg).sum(axis=(1, 3))
    mean = gsum / denom
    var = jnp.maximum(gsq / denom - mean * mean, 0.0)
    inv = jax.lax.rsqrt(var + eps)
    mean_c = jnp.repeat(mean, cpg, axis=1)                 # (B, Cout)
    inv_c = jnp.repeat(inv, cpg, axis=1)
    scale_c = inv_c * gamma.astype(f32)[None, :]
    shift_c = (bias.astype(f32)[None, :] - mean_c) * scale_c + beta.astype(f32)[None, :]
    scale4 = jnp.tile(scale_c, (1, 4)).reshape(B, 1, C4)   # (B, 1, 4*Cout)
    shift4 = jnp.tile(shift_c, (1, 4)).reshape(B, 1, C4)

    # ---------------- pass 2: conv recompute + affine + Mish -----------------
    vmem2 = _vmem_limit([((1, THW, KKC), matmul_dtype),
                         ((KKC, C4), matmul_dtype),
                         ((1, 1, C4), jnp.float32),
                         ((1, 1, C4), jnp.float32),
                         ((1, THW, C4), out_dtype)])
    out4 = pl.pallas_call(
        _conv_norm_mish_kernel,
        out_shape=jax.ShapeDtypeStruct((B, HW_pad, C4), out_dtype),
        grid_spec=pltpu.PrefetchScalarGridSpec(
            num_scalar_prefetch=0,
            grid=(B, n_t),
            in_specs=[
                pl.BlockSpec((1, THW, KKC), lambda b, t: (b, t, 0)),
                pl.BlockSpec((KKC, C4), lambda b, t: (0, 0)),
                pl.BlockSpec((1, 1, C4), lambda b, t: (b, 0, 0)),
                pl.BlockSpec((1, 1, C4), lambda b, t: (b, 0, 0)),
            ],
            out_specs=pl.BlockSpec((1, THW, C4), lambda b, t: (b, t, 0)),
        ),
        compiler_params=pltpu.CompilerParams(
            dimension_semantics=("parallel", "parallel"),
            vmem_limit_bytes=vmem2),
    )(patches, w4, scale4, shift4)

    # TODO(synk): skip this interleave when the consumer accepts the phase-major
    # (B, HW, 4*Cout) layout; it costs one extra output round trip in XLA.
    out4 = out4[:, :HW, :]
    out = out4.reshape(B, H, W, 2, 2, Cout)
    out = jnp.transpose(out, (0, 5, 1, 3, 2, 4)).reshape(B, Cout, 2 * H, 2 * W)
    return out


# --------------------------- pure-JAX reference ---------------------------- #
def up_conv_reference(x_nchw, w_oihw, bias, gamma, beta, *, groups=16, eps=1e-5):
    xu = jnp.repeat(jnp.repeat(x_nchw, 2, axis=2), 2, axis=3)
    y = jax.lax.conv_general_dilated(
        xu, w_oihw, window_strides=(1, 1), padding="SAME",
        dimension_numbers=("NCHW", "OIHW", "NCHW"))
    y = y + bias[None, :, None, None]
    B, C, H, W = y.shape
    yr = y.reshape(B, groups, C // groups, H, W)
    mean = yr.mean(axis=(2, 3, 4), keepdims=True)
    var = yr.var(axis=(2, 3, 4), keepdims=True)
    yn = ((yr - mean) / jnp.sqrt(var + eps)).reshape(B, C, H, W)
    yn = yn * gamma[None, :, None, None] + beta[None, :, None, None]
    return yn * jnp.tanh(jax.nn.softplus(yn))


# ----------------------------------- main ---------------------------------- #
if __name__ == "__main__":
    B, Cin, Cout, H, W = 2, 4, 32, 16, 16    # Cout divisible by 16 (GroupNorm(16))

    key = jax.random.PRNGKey(0)
    kx, kw, kb, kg, kbt = jax.random.split(key, 5)

    x = jax.random.normal(kx, (B, Cin, H, W), dtype=jnp.float32)
    w = jax.random.normal(kw, (Cout, Cin, 3, 3), dtype=jnp.float32) * 0.2
    bias = jax.random.normal(kb, (Cout,), dtype=jnp.float32) * 0.1
    gamma = 1.0 + 0.1 * jax.random.normal(kg, (Cout,), dtype=jnp.float32)
    beta = 0.1 * jax.random.normal(kbt, (Cout,), dtype=jnp.float32)

    ref = up_conv_reference(x, w, bias, gamma, beta)

    # f32-matmul path with small HW tiles: exercises the multi-tile partial-sum
    # statistics (n_t > 1) and the fully-parallel pass-1 grid.
    out_f32 = up_conv_forward(x, w, bias, gamma, beta, tile_rows=64,
                              matmul_dtype=jnp.float32, out_dtype=jnp.float32)
    out_f32 = jax.block_until_ready(out_f32)
    assert out_f32.shape == (B, Cout, 2 * H, 2 * W), out_f32.shape
    assert jnp.allclose(out_f32, ref, rtol=2e-2, atol=2e-2), float(
        jnp.max(jnp.abs(out_f32 - ref)))

    # Production config: bf16 matmuls + bf16 output store, large default tiles.
    out_bf16 = up_conv_forward(x, w, bias, gamma, beta,
                               matmul_dtype=jnp.bfloat16, out_dtype=jnp.bfloat16)
    out_bf16 = jax.block_until_ready(out_bf16)
    assert out_bf16.shape == (B, Cout, 2 * H, 2 * W), out_bf16.shape
    assert jnp.allclose(out_bf16.astype(jnp.float32), ref, rtol=1e-1, atol=1e-1), \
        float(jnp.max(jnp.abs(out_bf16.astype(jnp.float32) - ref)))

    # Non-divisible H*W: exercises the padded-tail tiling path (no whole-image
    # fallback, padded rows excluded from statistics and sliced off the output).
    x2 = jax.random.normal(kx, (1, Cin, 10, 10), dtype=jnp.float32)
    ref2 = up_conv_reference(x2, w, bias, gamma, beta)
    out2 = up_conv_forward(x2, w, bias, gamma, beta, tile_rows=64,
                           matmul_dtype=jnp.float32, out_dtype=jnp.float32)
    out2 = jax.block_until_ready(out2)
    assert out2.shape == (1, Cout, 20, 20), out2.shape
    assert jnp.allclose(out2, ref2, rtol=2e-2, atol=2e-2), float(
        jnp.max(jnp.abs(out2 - ref2)))

    print("KERNEL_OK")
</pallas_src>

<mosaic_0001>
module attributes {stable_mosaic.version = 11 : i64} {
  func.func @_stats_kernel(%arg0: i32, %arg1: i32, %arg2: memref<1x64x36xf32, #tpu.memory_space<vmem>>, %arg3: memref<36x128xf32, #tpu.memory_space<vmem>>, %arg4: memref<1x8x128xf32, #tpu.memory_space<vmem>>, %arg5: memref<1x8x128xf32, #tpu.memory_space<vmem>>) attributes {dimension_semantics = [#tpu.dimension_semantics<parallel>, #tpu.dimension_semantics<parallel>], iteration_bounds = array<i64: 2, 4>, scalar_prefetch = 0 : i64, scratch_operands = 0 : i64, tpu.core_type = #tpu.core_type<tc>, window_params = [{transform_indices = @transform_0, window_bounds = array<i64: 1, 64, 36>}, {pipeline_mode = #tpu.pipeline_mode<synchronous>, transform_indices = @transform_1, window_bounds = array<i64: 36, 128>}, {transform_indices = @transform_2, window_bounds = array<i64: 1, 8, 128>}, {transform_indices = @transform_3, window_bounds = array<i64: 1, 8, 128>}]} {
    %c0 = arith.constant 0 : index
    %c0_0 = arith.constant 0 : index
    %c0_1 = arith.constant 0 : index
    %0 = vector.load %arg2[%c0, %c0_0, %c0_1] : memref<1x64x36xf32, #tpu.memory_space<vmem>>, vector<1x64x36xf32>
    %1 = vector.shape_cast %0 : vector<1x64x36xf32> to vector<64x36xf32>
    %c0_2 = arith.constant 0 : index
    %c0_3 = arith.constant 0 : index
    %2 = vector.load %arg3[%c0_2, %c0_3] : memref<36x128xf32, #tpu.memory_space<vmem>>, vector<36x128xf32>
    %cst = arith.constant dense<0.000000e+00> : vector<64x128xf32>
    %3 = tpu.matmul %1, %2, %cst {dimension_numbers = #tpu.dot_dimension_numbers<[1], [0], [0], [1], [0, 0, 1, 1], [], []>} : vector<64x36xf32>, vector<36x128xf32>, vector<64x128xf32> -> vector<64x128xf32>
    %cst_4 = arith.constant dense<0.000000e+00> : vector<128xf32>
    %4 = vector.multi_reduction <add>, %3, %cst_4 [0] : vector<64x128xf32> to vector<128xf32>
    %5 = vector.shape_cast %4 : vector<128xf32> to vector<1x128xf32>
    %6 = arith.mulf %3, %3 : vector<64x128xf32>
    %cst_5 = arith.constant dense<0.000000e+00> : vector<128xf32>
    %7 = vector.multi_reduction <add>, %6, %cst_5 [0] : vector<64x128xf32> to vector<128xf32>
    %8 = vector.shape_cast %7 : vector<128xf32> to vector<1x128xf32>
    %9 = vector.shape_cast %5 : vector<1x128xf32> to vector<1x128xf32>
    %10 = vector.broadcast %9 : vector<1x128xf32> to vector<8x128xf32>
    %c0_6 = arith.constant 0 : index
    %c0_7 = arith.constant 0 : index
    %c0_8 = arith.constant 0 : index
    %11 = vector.load %arg4[%c0_6, %c0_7, %c0_8] : memref<1x8x128xf32, #tpu.memory_space<vmem>>, vector<1x8x128xf32>
    %12 = vector.shape_cast %11 : vector<1x8x128xf32> to vector<8x128xf32>
    %13 = vector.shape_cast %10 : vector<8x128xf32> to vector<1x8x128xf32>
    tpu.vector_store %arg4[%c0_6, %c0_7, %c0_8], %13 {strides = array<i32>} : memref<1x8x128xf32, #tpu.memory_space<vmem>>, vector<1x8x128xf32>,
    %14 = vector.shape_cast %8 : vector<1x128xf32> to vector<1x128xf32>
    %15 = vector.broadcast %14 : vector<1x128xf32> to vector<8x128xf32>
    %c0_9 = arith.constant 0 : index
    %c0_10 = arith.constant 0 : index
    %c0_11 = arith.constant 0 : index
    %16 = vector.load %arg5[%c0_9, %c0_10, %c0_11] : memref<1x8x128xf32, #tpu.memory_space<vmem>>, vector<1x8x128xf32>
    %17 = vector.shape_cast %16 : vector<1x8x128xf32> to vector<8x128xf32>
    %18 = vector.shape_cast %15 : vector<8x128xf32> to vector<1x8x128xf32>
    tpu.vector_store %arg5[%c0_9, %c0_10, %c0_11], %18 {strides = array<i32>} : memref<1x8x128xf32, #tpu.memory_space<vmem>>, vector<1x8x128xf32>,
    return
  }
  func.func @transform_0(%arg0: i32, %arg1: i32) -> (i32, i32, i32) {
    %c0_i32 = arith.constant 0 : i32
    %c0_i32_0 = arith.constant 0 : i32
    return %arg0, %arg1, %c0_i32 : i32, i32, i32
  }
  func.func @transform_1(%arg0: i32, %arg1: i32) -> (i32, i32) {
    %c0_i32 = arith.constant 0 : i32
    %c0_i32_0 = arith.constant 0 : i32
    %c0_i32_1 = arith.constant 0 : i32
    return %c0_i32, %c0_i32_0 : i32, i32
  }
  func.func @transform_2(%arg0: i32, %arg1: i32) -> (i32, i32, i32) {
    %c0_i32 = arith.constant 0 : i32
    %c0_i32_0 = arith.constant 0 : i32
    return %arg0, %arg1, %c0_i32 : i32, i32, i32
  }
  func.func @transform_3(%arg0: i32, %arg1: i32) -> (i32, i32, i32) {
    %c0_i32 = arith.constant 0 : i32
    %c0_i32_0 = arith.constant 0 : i32
    return %arg0, %arg1, %c0_i32 : i32, i32, i32
  }
}

</mosaic_0001>

<bundles_post_ra>
// kernel: tpu_custom_call.1
= control target key start
LH: loop header
LB: loop body
LE: loop exit
PB: predicated region body
PF: predicated region fallthrough
CT: control target
= control target key end

     0   :  { %9 = vsyncpa [#allocation3], 0  ;;  %s1031_s0 = inlined_call_operand.vmem [shape: f32[2,256,36], index: 0, kind: input, shape index: {}]   ;;  %s1032_s1 = inlined_call_operand.vmem [shape: f32[36,128], index: 1, kind: input, shape index: {}]   ;;  %s1033_s2 = inlined_call_operand.hbm [shape: f32[2,32,128], index: 2, kind: output, shape index: {0}]   ;;  %s1034_s3 = inlined_call_operand.hbm [shape: f32[2,32,128], index: 3, kind: output, shape index: {1}]  }
   0x1   :  { %11 = vsyncpa [#allocation3 + $0x1], 0 }
   0x2   :  { %12 = vsyncpa [#allocation5], 0 }
   0x3   :  { %14 = vsyncpa [#allocation5 + $0x1], 0  ;;  %s837_s12 = smov 0   ;;  %s839_s13 = smov 0  }
   0x4   :  { %s841_s14 = smov 0   ;;  %s843_s15 = smov 0  }
   0x5   :  { %s845_s16 = smov 0   ;;  %s847_s17 = smov 0  }
   0x6   :  { %s849_s18 = smov 0   ;;  %s851_s19 = smov 0  }
   0x7 LB: > { %s543_s20 = sadd.s32 4294967295, %s813_s19   ;;  %s544_s21 = sadd.s32 4294967294, %s813_s19   ;;  %s813_s19 = sphi %s851_s19, %s20_s19   ;;  %s809_s18 = sphi %s849_s18, %s1043_s18   ;;  %s805_s17 = sphi %s847_s17, %s1042_s17   ;;  %s801_s16 = sphi %s845_s16, %s1041_s16   ;;  %s797_s15 = sphi %s843_s15, %s1040_s15   ;;  %s793_s14 = sphi %s841_s14, %s1039_s14   ;;  %s789_s13 = sphi %s839_s13, %s1038_s13   ;;  %s785_s12 = sphi %s837_s12, %s1037_s12  }
   0x8   : > { %s29_s22 = sadd.s32 1, %s805_s17  ;;  %s32_s23 = sadd.s32 1, %s809_s18 }
   0x9   : > { %p30_p0 = scmp.ge.s32.totalorder %s29_s22, 4  ;;  %p100_p1 = scmp.ne.s32.totalorder %s793_s14, %s789_s13 }
   0xa   : > { %p101_p2 = scmp.eq.s32.totalorder %s543_s20, 7  ;;  %p106_p5 = scmp.ne.s32.totalorder %s789_s13, %s785_s12 }
   0xb   : > { %s1045_s22 = smov (%p30_p0, %s29_s22), 0  ;;  %s1047_s23 = smov (!%p30_p0, %s32_s23), %s809_s18 }
   0xc   : > { %s86_s24 = ssub.s32 %s805_s17, %s1045_s22  ;;  %p888_p3 = por %p101_p2, %p100_p1 }
   0xd   : > { %p34_p4 = scmp.ge.s32.totalorder %s1047_s23, 2  ;;  %p107_p6 = scmp.eq.s32.totalorder %s544_s21, 7 }
   0xe   : > { %p547_p7 = scmp.ge.s32.totalorder %s813_s19, 1  ;;  %p169_p9 = scmp.lt.s32.totalorder %s813_s19, 9 }
   0xf   : > { %s1049_s23 = smov (%p34_p4, %s1047_s23), 0  ;;  %p897_p8 = por %p107_p6, %p106_p5 }
  0x10   : > { %s85_s27 = ssub.s32 %s809_s18, %s1049_s23  ;;  %s90_s28 = sadd.s32 1, %s793_s14 }
  0x11   : > { %s87_s29 = sor.u32 %s86_s24, %s85_s27  ;;  %p170_p10 = pnand %p547_p7, %p169_p9 }
  0x12   : > { %p88_p11 = scmp.eq.s32.totalorder %s87_s29, 0  ;;  %s550_s8 = sshll.u32 (!%p170_p10), %s797_s15, 3 }
  0x13   : > { %173 = sbr.rel (%p170_p10) target bundleno = 293 (0x125), region = 28  ;;  %p203_p12 = scmp.lt.s32.totalorder (!%p170_p10), %s801_s16, 1 }
  0x14   : > { %s906_s30 = scalar_select %p88_p11, %s793_s14, %s90_s28  }
  0x15   : > { %p205_p13 = scmp.lt.s32.totalorder (!%p170_p10), %s550_s8, 31  ;;  %s564_s10 = sshll.u32 (!%p170_p10), %s801_s16, 2 }
  0x18   : > { %v224_v0 = vld [vmem:[%s1032_s1 + $0x20] sm:$0xf]  ;;  %vm250_vm0 = vcmask 1043456   ;;  %v223_v1 = vld [vmem:[%s1032_s1 + $0x18] sm:$0xff]  ;;  %v222_v2 = vld [vmem:[%s1032_s1 + $0x10] sm:$0xff]  ;;  %s204_s11 = scalar_select %p203_p12, %s801_s16, 1 }
  0x19   : > { %583 = vmatprep.subr.msk.mxu0 %vm250_vm0, %v224_v0  ;;  %605 = vmatprep.subr.msk.mxu1 %vm250_vm0, %v224_v0  ;;  %v221_v3 = vld [vmem:[%s1032_s1 + $0x8] sm:$0xff]  ;;  %s1051_s8 = smov (!%p205_p13, %s550_s8), 31  ;;  %v220_v4 = vld [vmem:[%s1032_s1] sm:$0xff]  ;;  %vm225_vm1 = vcmask 293888  }
  0x1a   : > { %584 = vmatpush3.msk.msra.mxu0 %vm250_vm0, %v224_v0  ;;  %610 = vmatpush3.msk.msra.mxu1 %vm250_vm0, %v224_v0  ;;  %s551_s24 = sshll.u32 %s204_s11, 5  ;;  %s412_s11 = sadd.s32 %s797_s15, %s564_s10 }
  0x1b   : > { %585 = vmatprep.subr.mxu0 %v223_v1  ;;  %606 = vmatprep.subr.mxu1 %v223_v1  ;;  %s208_s29 = sadd.s32 %s551_s24, %s1051_s8  ;;  %s938_s8 = sand.u32 1, %s789_s13  }
  0x1c   : > { %586 = vmatpush3.msra.mxu0 %v223_v1  ;;  %611 = vmatpush3.msra.mxu1 %v223_v1  ;;  %s552_s4 = sshll.u32 %s208_s29, 3  ;;  %s548_s9 = sshll.u32 %s938_s8, 3 }
  0x1d   : > { %587 = vmatprep.subr.mxu0 %v222_v2  ;;  %607 = vmatprep.subr.mxu1 %v222_v2  ;;  %s210_s7 = scalar_lea.vmem %s1031_s0, %s552_s4  ;;  %s565_s20 = sshll.u32 %s412_s11, 7 }
  0x1e   : > { %588 = vmatpush3.msra.mxu0 %v222_v2  ;;  %612 = vmatpush3.msra.mxu1 %v222_v2  ;;  %v212_v5 = vld [vmem:[%s210_s7] sm:$0xff]  ;;  %v213_v6 = vld [vmem:[%s210_s7 + $0x8] sm:$0xff]  ;;  %v214_v7 = vld [vmem:[%s210_s7 + $0x10] sm:$0xff]  ;;  %s194_s21 = scalar_lea.vmem [#allocation2], %s548_s9  ;;  %s943_s27 = scalar_lea.vmem [#allocation4], %s548_s9 }
  0x1f   : > { %589 = vmatprep.subr.mxu0 %v221_v3  ;;  %608 = vmatprep.subr.mxu1 %v221_v3  ;;  %v216_v8 = vld [vmem:[%s210_s7 + $0x20] sm:$0xff]  ;;  %v217_v9 = vld [vmem:[%s210_s7 + $0x28] sm:$0xff]  ;;  %v218_v10 = vld [vmem:[%s210_s7 + $0x30] sm:$0xff]  ;;  %s416_s24 = sshll.u32 %s194_s21, 4  ;;  %s431_s28 = sshll.u32 %s943_s27, 4  ;;  %s951_s24 = int_to_ptr.vmem [resolvable:$true] %s416_s24  ;;  %s958_s28 = int_to_ptr.vmem [resolvable:$true] %s431_s28 }
  0x20   : > { %590 = vmatpush3.msra.mxu0 %v221_v3  ;;  %613 = vmatpush3.msra.mxu1 %v221_v3  ;;  %v215_v11 = vld [vmem:[%s210_s7 + $0x18] sm:$0xff]  ;;  %s949_s4 = scalar_lea.hbm %s1033_s2, %s565_s20  ;;  %s956_s6 = scalar_lea.hbm %s1034_s3, %s565_s20 }
  0x21   : > { %591 = vmatprep.subr.mxu0 %v220_v4  ;;  %609 = vmatprep.subr.mxu1 %v220_v4  ;;  %v219_v12 = vld [vmem:[%s210_s7 + $0x38] sm:$0xff]  ;;  %s396_s7 = scalar_lea.sflag [#allocation3], %s938_s8  ;;  %s691_s9 = scalar_lea.vmem %s951_s24, 128 }
  0x22   : > { %592 = vmatpush3.msra.mxu0 %v220_v4  ;;  %593 = vmatprep.mubr.msk.f32.mxu0 %vm225_vm1, %v212_v5  ;;  %p692_p0 = scmp.ne.s32.totalorder %s951_s24, %s691_s9  ;;  %s815_s10 = smov [#allocation2]  }
  0x23   : > { %594 = vmatmul.mubr.msk.f32.vlgmr.msra.gmra.mxu0 %vm225_vm1, %v213_v6  ;;  %614 = vmatpush3.msra.mxu1 %v220_v4  ;;  %s695_s11 = sshll.u32 %s815_s10, 4  ;;  %s696_s11 = int_to_ptr.vmem [resolvable:$false] %s695_s11 }
  0x24   : > { %596 = vmatprep.mubr.msk.f32.mxu0 %vm225_vm1, %v214_v7  ;;  %599 = vmatprep.mubr.msk.f32.mxu1 %vm225_vm1, %v216_v8  ;;  %p693_p1 = pnand %p692_p0, %p888_p3  ;;  %s697_s16 = scalar_lea.vmem %s696_s11, 256 }
  0x25   : > { %600 = vmatmul.mubr.msk.f32.vlgmr.msra.gmra.mxu1 %vm225_vm1, %v217_v9  ;;  %p698_p4 = scmp.lt.s32.totalorder %s951_s24, %s696_s11  ;;  %p699_p5 = scmp.lt.s32.totalorder %s697_s16, %s691_s9 }
  0x26   : > { %602 = vmatprep.mubr.msk.f32.mxu1 %vm225_vm1, %v218_v10  ;;  %p694_p2 = pneg %p693_p1 }
  0x27   : > { %597 = vmatmul.mubr.msk.f32.gmra.mxu0 %vm225_vm1, %v215_v11  ;;  %p700_p6 = por %p699_p5, %p698_p4 }
  0x29   : > { %603 = vmatmul.mubr.msk.f32.gmra.mxu1 %vm225_vm1, %v219_v12  ;;  %p701_p7 = pnand %p700_p6, %p694_p2 }
  0xe3   : > { %v595_v13 = vpop.f32.mrf.mxu0 }
  0xe4   : > { %v373_v19 = vmul.f32 %v595_v13, %v595_v13 }
  0xe5   : > { %v320_v14 = vpop.f32.mrf.mxu0  ;;  %v601_v15 = vpop.f32.mrf.mxu1 }
  0xe6   : > { %v372_v16 = vmul.f32 %v320_v14, %v320_v14  ;;  %v359_v20 = vadd.f32 %v595_v13, %v320_v14  ;;  %v377_v33 = vmul.f32 %v601_v15, %v601_v15 }
  0xe7   : > { %v598_v17 = vpop.f32.mrf.mxu0  ;;  %v340_v18 = vpop.f32.mrf.mxu1 }
  0xe8   : > { %v380_v22 = vadd.f32 %v373_v19, %v372_v16  ;;  %v375_v26 = vmul.f32 %v598_v17, %v598_v17  ;;  %v376_v31 = vmul.f32 %v340_v18, %v340_v18 }
  0xe9   : > { %v330_v21 = vpop.f32.mrf.mxu0  ;;  %v604_v25 = vpop.f32.mrf.mxu1 }
  0xea   : > { %v360_v23 = vadd.f32 %v359_v20, %v330_v21  ;;  %v374_v24 = vmul.f32 %v330_v21, %v330_v21  ;;  %v379_v39 = vmul.f32 %v604_v25, %v604_v25 }
  0xeb   : > { %v350_v32 = vpop.f32.mrf.mxu1 }
  0xec   : > { %v361_v27 = vadd.f32 %v598_v17, %v360_v23  ;;  %v381_v28 = vadd.f32 %v380_v22, %v374_v24  ;;  %v378_v37 = vmul.f32 %v350_v32, %v350_v32 }
  0xee   : > { %v382_v29 = vadd.f32 %v381_v28, %v375_v26  ;;  %v362_v30 = vadd.f32 %v361_v27, %v340_v18 }
  0xf0   : > { %v383_v34 = vadd.f32 %v382_v29, %v376_v31  ;;  %v363_v35 = vadd.f32 %v601_v15, %v362_v30 }
  0xf2   : > { %v364_v36 = vadd.f32 %v363_v35, %v350_v32  ;;  %v384_v38 = vadd.f32 %v383_v34, %v377_v33 }
  0xf4   : > { %v365_v40 = vadd.f32 %v604_v25, %v364_v36  ;;  %v385_v41 = vadd.f32 %v384_v38, %v378_v37 }
  0xf6   : > { %v366_v42 = vrot.slane %v365_v40, 4  ;;  %v386_v43 = vadd.f32 %v385_v41, %v379_v39 }
  0xf8   : > { %v367_v44 = vadd.f32 %v366_v42, %v365_v40  ;;  %v387_v45 = vrot.slane %v386_v43, 4 }
  0xfa   : > { %v368_v46 = vrot.slane %v367_v44, 2  ;;  %v388_v47 = vadd.f32 %v387_v45, %v386_v43 }
  0xfc   : > { %v369_v48 = vadd.f32 %v368_v46, %v367_v44  ;;  %v389_v49 = vrot.slane %v388_v47, 2 }
  0xfe   : > { %v370_v50 = vrot.slane %v369_v48, 1  ;;  %v390_v51 = vadd.f32 %v389_v49, %v388_v47 }
 0x100   : > { %v371_v52 = vadd.f32 %v370_v50, %v369_v48  ;;  %v391_v53 = vrot.slane %v390_v51, 1 }
 0x102   : > { %393 = vst [vmem:[%s194_s21] sm:$0xff] %v371_v52  ;;  %v392_v54 = vadd.f32 %v391_v53, %v390_v51 }
 0x103   : > { %704 = shalt.err (!%p701_p7)
}
 0x104   : > { %s705_s20 = scalar_lea.hbm %s949_s4, 128  ;;  %s709_s15 = scalar_lea.hbm %s1033_s2, 1024 }
 0x105   : > { %p706_p9 = scmp.ne.s32.totalorder %s949_s4, %s705_s20  ;;  %p710_p12 = scmp.lt.s32.totalorder %s949_s4, %s1033_s2 }
 0x106   : > { %p711_p13 = scmp.lt.s32.totalorder %s709_s15, %s705_s20 }
 0x107   : > { %p707_p10 = pnand %p706_p9, %p888_p3 }
 0x108   : > { %p712_p0 = por %p711_p13, %p710_p12 }
 0x109   : > { %p708_p11 = pneg %p707_p10 }
 0x10b   : > { %p713_p1 = pnand %p712_p0, %p708_p11 }
 0x10d   : > { %716 = shalt.err (!%p713_p1)
}
 0x10e   : > { %615 = dma.vmem_to_hbm [thread:$0]  (%p888_p3), %s951_s24, 128, %s949_s4, %s396_s7   ;;  %394 = vst [vmem:[%s943_s27] sm:$0xff] %v392_v54 }
 0x10f   : > { %s401_s9 = scalar_lea.sflag [#allocation5], %s938_s8  ;;  %s717_s11 = scalar_lea.vmem %s958_s28, 128 }
 0x110   : > { %p718_p2 = scmp.ne.s32.totalorder %s958_s28, %s717_s11  ;;  %s816_s16 = smov [#allocation4]  }
 0x111   : > { %s721_s20 = sshll.u32 %s816_s16, 4  ;;  %s722_s20 = int_to_ptr.vmem [resolvable:$false] %s721_s20 }
 0x112   : > { %p719_p4 = pnand %p718_p2, %p888_p3  ;;  %s723_s21 = scalar_lea.vmem %s722_s20, 256 }
 0x113   : > { %p724_p6 = scmp.lt.s32.totalorder %s958_s28, %s722_s20  ;;  %p725_p7 = scmp.lt.s32.totalorder %s723_s21, %s717_s11 }
 0x114   : > { %p720_p5 = pneg %p719_p4 }
 0x115   : > { %p726_p9 = por %p725_p7, %p724_p6 }
 0x117   : > { %p727_p10 = pnand %p726_p9, %p720_p5 }
 0x119   : > { %730 = shalt.err (!%p727_p10)
}
 0x11a   : > { %s731_s24 = scalar_lea.hbm %s956_s6, 128  ;;  %s735_s4 = scalar_lea.hbm %s1034_s3, 1024 }
 0x11b   : > { %p732_p11 = scmp.ne.s32.totalorder %s956_s6, %s731_s24  ;;  %p736_p0 = scmp.lt.s32.totalorder %s956_s6, %s1034_s3 }
 0x11c   : > { %p737_p1 = scmp.lt.s32.totalorder %s735_s4, %s731_s24 }
 0x11d   : > { %p733_p12 = pnand %p732_p11, %p888_p3 }
 0x11e   : > { %p738_p2 = por %p737_p1, %p736_p0 }
 0x11f   : > { %p734_p13 = pneg %p733_p12 }
 0x121   : > { %p739_p4 = pnand %p738_p2, %p734_p13 }
 0x123   : > { %742 = shalt.err (!%p739_p4)
}
 0x124   : > { %616 = dma.vmem_to_hbm [thread:$0]  (%p888_p3), %s958_s28, 128, %s956_s6, %s401_s9  }
 0x125 PF: > { %p626_p5 = scmp.ge.s32.totalorder %s813_s19, 2  ;;  %s443_s15 = sand.u32 1, %s785_s12  }
 0x126   : > { %s444_s5 = scalar_lea.sflag [#allocation3], %s443_s15 }
 0x127   : > { %p620_p6 = pnand %p626_p5, %p897_p8 }
 0x129   : > { %p621_p7 = pneg %p620_p6 }
 0x12b   : > { %776 = dma.done.wait (%p621_p7), %s444_s5, 128  }
 0x12c   : > { %778 = vsyncadd (%p621_p7), %s444_s5, 4294967168  ;;  %s453_s10 = scalar_lea.sflag [#allocation5], %s443_s15 }
 0x12d   : > { %780 = dma.done.wait (%p621_p7), %s453_s10, 128  }
 0x12e   : > { %782 = vsyncadd (%p621_p7), %s453_s10, 4294967168  ;;  %s20_s19 = sadd.s32 1, %s813_s19   ;;  %s1037_s12 = smov %s789_s13 }
 0x12f   : > { %p17_p9 = scmp.ge.s32.totalorder %s20_s19, 10   ;;  %s1038_s13 = smov %s793_s14 }
 0x130   : > { %s1039_s14 = smov %s906_s30  ;;  %s1040_s15 = smov %s805_s17 }
 0x131   : > { %s1041_s16 = smov %s809_s18  ;;  %s1042_s17 = smov %s1045_s22 }
 0x132   : > { %s1043_s18 = smov %s1049_s23  ;;  %19 = sbr.rel (!%p17_p9) target bundleno = 7 (0x7), region = 80 }
 0x137   :  { %458 = vsyncpa [#allocation3], 1 }
 0x138   :  { %460 = vsyncpa [#allocation3 + $0x1], 1 }
 0x139   :  { %461 = vsyncpa [#allocation5], 1 }
 0x13a   :  { %463 = vsyncpa [#allocation5 + $0x1], 1 }

</bundles_post_ra>
